<compile_context>
chip_gen: v6e
topology: v6e:2x2x1
jax: 0.10.0
libtpu: 0.0.40
codegen_flags: <defaults>
</compile_context>

<pallas_src>
import jax
import jax.numpy as jnp
from jax.experimental import pallas as pl
from jax.experimental.pallas import tpu as pltpu


D_IN = 784          # flattened 28x28 image
HIDDEN = 256
N_CLASSES = 10
N_CLASSES_PAD = 16  # class-bias table padded to a clean sublane multiple


# ---------------------------------------------------------------------------
# Pallas kernel: full 3-layer MLP forward for one batch tile.
# ---------------------------------------------------------------------------
def _disc_mlp_kernel(x_ref, lbl_ref, cls_ref, w1_ref, w2_ref, b2_ref,
                     w3_ref, b3_ref, o_ref):
    tb = x_ref.shape[0]

    # Per-row class bias rebuilt in-kernel: exact one-hot (f32) gather via a
    # tiny (tb, 16) @ (16, 256) matmul.  Labels cost 4 B/row instead of the
    # 1 KiB/row f32 row_bias stream of the previous version.
    iota = jax.lax.broadcasted_iota(jnp.int32, (tb, N_CLASSES_PAD), 1)
    onehot = jnp.where(iota == lbl_ref[...], 1.0, 0.0).astype(jnp.float32)
    row_bias = jnp.dot(onehot, cls_ref[...],
                       preferred_element_type=jnp.float32)       # (tb, 256)

    # Layer 1: (tb, 784)bf16 @ (784, 256)bf16 -> f32, + class bias (incl. b1).
    # x arrives f32 straight from HBM and is cast on the VPU here (no
    # wrapper-side pad/cast pass).
    h1 = jnp.dot(x_ref[...].astype(jnp.bfloat16), w1_ref[...],
                 preferred_element_type=jnp.float32) + row_bias
    h1 = jnp.where(h1 > 0, h1, 0.2 * h1)          # LeakyReLU(0.2), f32 VPU

    # Layer 2: (tb, 256)bf16 @ (256, 256)bf16 -> f32, + b2
    h2 = jnp.dot(h1.astype(jnp.bfloat16), w2_ref[...],
                 preferred_element_type=jnp.float32) + b2_ref[...]
    h2 = jnp.where(h2 > 0, h2, 0.2 * h2)

    # Layer 3: Linear(256 -> 1) as VPU multiply + XLU lane reduction, written
    # lane-dense as a (1, 1, tb) row (no masked 1-lane stores).
    logits = jnp.sum(h2 * w3_ref[...], axis=-1)                   # (tb,) f32
    o_ref[...] = (logits[None, None, :] + b3_ref[...]).astype(o_ref.dtype)


def discriminator_mlp(xp, lbl, cls_table, w1, w2, b2, w3_row, b3, *, tb):
    """xp: (Bp, 784) f32; lbl: (Bp, 1) int32; cls_table: (16, 256) f32;
    w1 (784,256)/w2 (256,256) bf16; b2 (1,256), w3_row (1,256), b3 (1,1) f32.
    Returns (Bp//tb, 1, tb) f32 (lane-dense; reshaped to (Bp,1) by caller)."""
    Bp, K = xp.shape
    H = w2.shape[0]
    assert Bp % tb == 0
    num_tiles = Bp // tb

    flops = 2 * Bp * (N_CLASSES_PAD * H + K * H + H * H + H)
    bytes_accessed = (xp.size * 4 + lbl.size * 4 + cls_table.size * 4
                      + w1.size * 2 + w2.size * 2 + b2.size * 4
                      + w3_row.size * 4 + b3.size * 4 + Bp * 4)

    return pl.pallas_call(
        _disc_mlp_kernel,
        out_shape=jax.ShapeDtypeStruct((num_tiles, 1, tb), jnp.float32),
        grid=(num_tiles,),
        in_specs=[
            pl.BlockSpec((tb, K), lambda i: (i, 0)),              # x tile (f32, pipelined)
            pl.BlockSpec((tb, 1), lambda i: (i, 0)),              # labels tile (int32)
            pl.BlockSpec((N_CLASSES_PAD, H), lambda i: (0, 0)),   # class-bias table (resident)
            pl.BlockSpec((K, H), lambda i: (0, 0)),               # W1 (resident)
            pl.BlockSpec((H, H), lambda i: (0, 0)),               # W2 (resident)
            pl.BlockSpec((1, H), lambda i: (0, 0)),               # b2
            pl.BlockSpec((1, H), lambda i: (0, 0)),               # w3 row
            pl.BlockSpec((1, 1), lambda i: (0, 0)),               # b3
        ],
        out_specs=pl.BlockSpec((1, 1, tb), lambda i: (i, 0, 0)),  # lane-dense rows
        compiler_params=pltpu.CompilerParams(
            dimension_semantics=("parallel",)),   # v7x: shard batch tiles over TCs
        cost_estimate=pl.CostEstimate(
            flops=flops, transcendentals=0, bytes_accessed=bytes_accessed),
    )(xp, lbl, cls_table, w1, w2, b2, w3_row, b3)


# ---------------------------------------------------------------------------
# Parameter initialization (deterministic, PyTorch-default-style).
# ---------------------------------------------------------------------------
def init_discriminator_params(key):
    k_emb, k1w, k1b, k2w, k2b, k3w, k3b = jax.random.split(key, 7)

    def linear(kw, kb, fan_in, fan_out):
        bound = 1.0 / jnp.sqrt(jnp.float32(fan_in))
        w = jax.random.uniform(kw, (fan_in, fan_out), jnp.float32,
                               minval=-bound, maxval=bound)
        b = jax.random.uniform(kb, (1, fan_out), jnp.float32,
                               minval=-bound, maxval=bound)
        return w, b

    emb = jax.random.normal(k_emb, (N_CLASSES, N_CLASSES), jnp.float32)
    w1, b1 = linear(k1w, k1b, D_IN + N_CLASSES, HIDDEN)
    w2, b2 = linear(k2w, k2b, HIDDEN, HIDDEN)
    w3, b3 = linear(k3w, k3b, HIDDEN, 1)
    return dict(emb=emb, w1=w1, b1=b1, w2=w2, b2=b2, w3=w3, b3=b3)


def discriminator_forward(params, x, labels, *, tb=512):
    """x: (B, 784) float32, labels: (B,) int in [0, 10).  Returns (B, 1) f32."""
    B = x.shape[0]
    H = params["w2"].shape[0]

    # Embedding-as-bias fold (exact): cat([x, emb[l]]) @ W1 + b1
    #   == x @ W1[:784] + (emb[l] @ W1[784:] + b1)
    # so a (10, H) table covers the embedding + concat; padded to 16 rows for
    # a clean sublane count in the in-kernel one-hot matmul.
    cls_table = params["emb"] @ params["w1"][D_IN:] + params["b1"]   # (10, H)
    cls_table = jnp.pad(cls_table, ((0, N_CLASSES_PAD - N_CLASSES), (0, 0)))

    # Batch tile: multiple of 16 (bf16 sublane packing), aim for >= 2 grid
    # tiles so v7x's second TensorCore gets work, default 512 (amortizes the
    # ~0.35us per-step overhead, fits v5e's 16 MiB scoped-VMEM default).
    target = min(tb, max(16, pl.cdiv(B, 2)))
    tb_eff = pl.cdiv(target, 16) * 16
    Bp = pl.cdiv(B, tb_eff) * tb_eff

    # x stays f32 and unpadded in K (no extra HBM pad/cast pass); only the
    # batch dim is padded when B is not a tile multiple.
    xp = x if Bp == B else jnp.pad(x, ((0, Bp - B), (0, 0)))
    lbl = labels.astype(jnp.int32).reshape(-1, 1)
    lbl = lbl if Bp == B else jnp.pad(lbl, ((0, Bp - B), (0, 0)))

    w1 = params["w1"][:D_IN].astype(jnp.bfloat16)    # (784, H) — K left ragged
    # TODO(synk): on v5e (MXU-bound after the byte fixes) pad K 784->896 for
    # clean 128-deep K tiles; on mem-bound v6e/v7x the unpadded K wins.
    w2 = params["w2"].astype(jnp.bfloat16)           # (H, H)
    w3_row = params["w3"].T                          # (1, H) f32

    out = discriminator_mlp(xp, lbl, cls_table, w1, w2, params["b2"],
                            w3_row, params["b3"], tb=tb_eff)
    return out.reshape(Bp, 1)[:B]


if __name__ == "__main__":
    key = jax.random.PRNGKey(0)
    k_params, k_x, k_lbl = jax.random.split(key, 3)

    B = 32
    params = init_discriminator_params(k_params)
    x = jax.random.normal(k_x, (B, D_IN), jnp.float32)        # flattened 28x28
    labels = jax.random.randint(k_lbl, (B,), 0, N_CLASSES, jnp.int32)

    out = discriminator_forward(params, x, labels)
    jax.block_until_ready(out)

    # Pure-JAX f32 reference of the original torch forward.
    def ref(params, x, labels):
        c = jnp.take(params["emb"], labels, axis=0)
        h = jnp.concatenate([x, c], axis=1)
        h = h @ params["w1"] + params["b1"]
        h = jnp.where(h > 0, h, 0.2 * h)
        h = h @ params["w2"] + params["b2"]
        h = jnp.where(h > 0, h, 0.2 * h)
        return h @ params["w3"] + params["b3"]

    expected = ref(params, x, labels)
    assert out.shape == (B, 1)
    # bf16 matmul operands (f32 accumulation) -> loosened tolerance.
    assert jnp.allclose(out, expected, atol=2e-2, rtol=2e-2)

    print("KERNEL_OK")
</pallas_src>

<mosaic_0001>
module attributes {stable_mosaic.version = 11 : i64} {
  func.func @_disc_mlp_kernel(%arg0: i32, %arg1: memref<16x784xf32, #tpu.memory_space<vmem>>, %arg2: memref<16x1xi32, #tpu.memory_space<vmem>>, %arg3: memref<16x256xf32, #tpu.memory_space<vmem>>, %arg4: memref<784x256xbf16, #tpu.memory_space<vmem>>, %arg5: memref<256x256xbf16, #tpu.memory_space<vmem>>, %arg6: memref<1x256xf32, #tpu.memory_space<vmem>>, %arg7: memref<1x256xf32, #tpu.memory_space<vmem>>, %arg8: memref<1x1xf32, #tpu.memory_space<vmem>>, %arg9: memref<1x1x16xf32, #tpu.memory_space<vmem>>) attributes {dimension_semantics = [#tpu.dimension_semantics<parallel>], iteration_bounds = array<i64: 2>, scalar_prefetch = 0 : i64, scratch_operands = 0 : i64, tpu.core_type = #tpu.core_type<tc>, window_params = [{transform_indices = @transform_0, window_bounds = array<i64: 16, 784>}, {transform_indices = @transform_1, window_bounds = array<i64: 16, 1>}, {pipeline_mode = #tpu.pipeline_mode<synchronous>, transform_indices = @transform_2, window_bounds = array<i64: 16, 256>}, {pipeline_mode = #tpu.pipeline_mode<synchronous>, transform_indices = @transform_3, window_bounds = array<i64: 784, 256>}, {pipeline_mode = #tpu.pipeline_mode<synchronous>, transform_indices = @transform_4, window_bounds = array<i64: 256, 256>}, {pipeline_mode = #tpu.pipeline_mode<synchronous>, transform_indices = @transform_5, window_bounds = array<i64: 1, 256>}, {pipeline_mode = #tpu.pipeline_mode<synchronous>, transform_indices = @transform_6, window_bounds = array<i64: 1, 256>}, {pipeline_mode = #tpu.pipeline_mode<synchronous>, transform_indices = @transform_7, window_bounds = array<i64: 1, 1>}, {transform_indices = @transform_8, window_bounds = array<i64: 1, 1, 16>}]} {
    %0 = tpu.iota {dimensions = array<i32: 1>} : vector<16x16xi32>
    %c0 = arith.constant 0 : index
    %c0_0 = arith.constant 0 : index
    %1 = vector.load %arg2[%c0, %c0_0] : memref<16x1xi32, #tpu.memory_space<vmem>>, vector<16x1xi32>
    %2 = vector.broadcast %1 : vector<16x1xi32> to vector<16x16xi32>
    %3 = arith.cmpi eq, %0, %2 : vector<16x16xi32>
    %cst = arith.constant 1.000000e+00 : f32
    %cst_1 = arith.constant 0.000000e+00 : f32
    %4 = vector.broadcast %cst : f32 to vector<16x16xf32>
    %5 = vector.broadcast %cst_1 : f32 to vector<16x16xf32>
    %6 = arith.select %3, %4, %5 : vector<16x16xi1>, vector<16x16xf32>
    %c0_2 = arith.constant 0 : index
    %c0_3 = arith.constant 0 : index
    %7 = vector.load %arg3[%c0_2, %c0_3] : memref<16x256xf32, #tpu.memory_space<vmem>>, vector<16x256xf32>
    %cst_4 = arith.constant dense<0.000000e+00> : vector<16x256xf32>
    %8 = tpu.matmul %6, %7, %cst_4 {dimension_numbers = #tpu.dot_dimension_numbers<[1], [0], [0], [1], [0, 0, 1, 1], [], []>} : vector<16x16xf32>, vector<16x256xf32>, vector<16x256xf32> -> vector<16x256xf32>
    %c0_5 = arith.constant 0 : index
    %c0_6 = arith.constant 0 : index
    %9 = vector.load %arg1[%c0_5, %c0_6] : memref<16x784xf32, #tpu.memory_space<vmem>>, vector<16x784xf32>
    %10 = arith.truncf %9 : vector<16x784xf32> to vector<16x784xbf16>
    %c0_7 = arith.constant 0 : index
    %c0_8 = arith.constant 0 : index
    %11 = vector.load %arg4[%c0_7, %c0_8] : memref<784x256xbf16, #tpu.memory_space<vmem>>, vector<784x256xbf16>
    %cst_9 = arith.constant dense<0.000000e+00> : vector<16x256xf32>
    %12 = tpu.matmul %10, %11, %cst_9 {dimension_numbers = #tpu.dot_dimension_numbers<[1], [0], [0], [1], [0, 0, 1, 1], [], []>} : vector<16x784xbf16>, vector<784x256xbf16>, vector<16x256xf32> -> vector<16x256xf32>
    %13 = arith.addf %12, %8 : vector<16x256xf32>
    %cst_10 = arith.constant 0.000000e+00 : f32
    %14 = vector.broadcast %cst_10 : f32 to vector<16x256xf32>
    %15 = arith.cmpf ogt, %13, %14 : vector<16x256xf32>
    %cst_11 = arith.constant 2.000000e-01 : f32
    %16 = vector.broadcast %cst_11 : f32 to vector<16x256xf32>
    %17 = arith.mulf %16, %13 : vector<16x256xf32>
    %18 = arith.select %15, %13, %17 : vector<16x256xi1>, vector<16x256xf32>
    %19 = arith.truncf %18 : vector<16x256xf32> to vector<16x256xbf16>
    %c0_12 = arith.constant 0 : index
    %c0_13 = arith.constant 0 : index
    %20 = vector.load %arg5[%c0_12, %c0_13] : memref<256x256xbf16, #tpu.memory_space<vmem>>, vector<256x256xbf16>
    %cst_14 = arith.constant dense<0.000000e+00> : vector<16x256xf32>
    %21 = tpu.matmul %19, %20, %cst_14 {dimension_numbers = #tpu.dot_dimension_numbers<[1], [0], [0], [1], [0, 0, 1, 1], [], []>} : vector<16x256xbf16>, vector<256x256xbf16>, vector<16x256xf32> -> vector<16x256xf32>
    %c0_15 = arith.constant 0 : index
    %c0_16 = arith.constant 0 : index
    %22 = vector.load %arg6[%c0_15, %c0_16] : memref<1x256xf32, #tpu.memory_space<vmem>>, vector<1x256xf32>
    %23 = vector.broadcast %22 : vector<1x256xf32> to vector<16x256xf32>
    %24 = arith.addf %21, %23 : vector<16x256xf32>
    %cst_17 = arith.constant 0.000000e+00 : f32
    %25 = vector.broadcast %cst_17 : f32 to vector<16x256xf32>
    %26 = arith.cmpf ogt, %24, %25 : vector<16x256xf32>
    %cst_18 = arith.constant 2.000000e-01 : f32
    %27 = vector.broadcast %cst_18 : f32 to vector<16x256xf32>
    %28 = arith.mulf %27, %24 : vector<16x256xf32>
    %29 = arith.select %26, %24, %28 : vector<16x256xi1>, vector<16x256xf32>
    %c0_19 = arith.constant 0 : index
    %c0_20 = arith.constant 0 : index
    %30 = vector.load %arg7[%c0_19, %c0_20] : memref<1x256xf32, #tpu.memory_space<vmem>>, vector<1x256xf32>
    %31 = vector.broadcast %30 : vector<1x256xf32> to vector<16x256xf32>
    %32 = arith.mulf %29, %31 : vector<16x256xf32>
    %cst_21 = arith.constant dense<0.000000e+00> : vector<16xf32>
    %33 = vector.multi_reduction <add>, %32, %cst_21 [1] : vector<16x256xf32> to vector<16xf32>
    %34 = vector.shape_cast %33 : vector<16xf32> to vector<1x1x16xf32>
    %c0_22 = arith.constant 0 : index
    %c0_23 = arith.constant 0 : index
    %35 = vector.load %arg8[%c0_22, %c0_23] : memref<1x1xf32, #tpu.memory_space<vmem>>, vector<1x1xf32>
    %36 = vector.shape_cast %35 : vector<1x1xf32> to vector<1x1x1xf32>
    %37 = vector.broadcast %36 : vector<1x1x1xf32> to vector<1x1x16xf32>
    %38 = arith.addf %34, %37 : vector<1x1x16xf32>
    %c0_24 = arith.constant 0 : index
    %c0_25 = arith.constant 0 : index
    %c0_26 = arith.constant 0 : index
    %39 = vector.load %arg9[%c0_24, %c0_25, %c0_26] : memref<1x1x16xf32, #tpu.memory_space<vmem>>, vector<1x1x16xf32>
    tpu.vector_store %arg9[%c0_24, %c0_25, %c0_26], %38 {strides = array<i32>} : memref<1x1x16xf32, #tpu.memory_space<vmem>>, vector<1x1x16xf32>,
    return
  }
  func.func @transform_0(%arg0: i32) -> (i32, i32) {
    %c0_i32 = arith.constant 0 : i32
    %c0_i32_0 = arith.constant 0 : i32
    return %arg0, %c0_i32 : i32, i32
  }
  func.func @transform_1(%arg0: i32) -> (i32, i32) {
    %c0_i32 = arith.constant 0 : i32
    %c0_i32_0 = arith.constant 0 : i32
    return %arg0, %c0_i32 : i32, i32
  }
  func.func @transform_2(%arg0: i32) -> (i32, i32) {
    %c0_i32 = arith.constant 0 : i32
    %c0_i32_0 = arith.constant 0 : i32
    %c0_i32_1 = arith.constant 0 : i32
    return %c0_i32, %c0_i32_0 : i32, i32
  }
  func.func @transform_3(%arg0: i32) -> (i32, i32) {
    %c0_i32 = arith.constant 0 : i32
    %c0_i32_0 = arith.constant 0 : i32
    %c0_i32_1 = arith.constant 0 : i32
    return %c0_i32, %c0_i32_0 : i32, i32
  }
  func.func @transform_4(%arg0: i32) -> (i32, i32) {
    %c0_i32 = arith.constant 0 : i32
    %c0_i32_0 = arith.constant 0 : i32
    %c0_i32_1 = arith.constant 0 : i32
    return %c0_i32, %c0_i32_0 : i32, i32
  }
  func.func @transform_5(%arg0: i32) -> (i32, i32) {
    %c0_i32 = arith.constant 0 : i32
    %c0_i32_0 = arith.constant 0 : i32
    %c0_i32_1 = arith.constant 0 : i32
    return %c0_i32, %c0_i32_0 : i32, i32
  }
  func.func @transform_6(%arg0: i32) -> (i32, i32) {
    %c0_i32 = arith.constant 0 : i32
    %c0_i32_0 = arith.constant 0 : i32
    %c0_i32_1 = arith.constant 0 : i32
    return %c0_i32, %c0_i32_0 : i32, i32
  }
  func.func @transform_7(%arg0: i32) -> (i32, i32) {
    %c0_i32 = arith.constant 0 : i32
    %c0_i32_0 = arith.constant 0 : i32
    %c0_i32_1 = arith.constant 0 : i32
    return %c0_i32, %c0_i32_0 : i32, i32
  }
  func.func @transform_8(%arg0: i32) -> (i32, i32, i32) {
    %c0_i32 = arith.constant 0 : i32
    %c0_i32_0 = arith.constant 0 : i32
    %c0_i32_1 = arith.constant 0 : i32
    return %arg0, %c0_i32, %c0_i32_0 : i32, i32, i32
  }
}

</mosaic_0001>

<bundles_post_ra>
// kernel: tpu_custom_call.1
= control target key start
LH: loop header
LB: loop body
LE: loop exit
PB: predicated region body
PF: predicated region fallthrough
CT: control target
= control target key end

     0   :  { %s2563_s0 = inlined_call_operand.hbm [shape: f32[32,784], index: 0, kind: input, shape index: {}]   ;;  %s2564_s1 = inlined_call_operand.vmem [shape: s32[32,1], index: 1, kind: input, shape index: {}]   ;;  %s2565_s2 = inlined_call_operand.vmem [shape: f32[16,256], index: 2, kind: input, shape index: {}]   ;;  %s2566_s3 = inlined_call_operand.hbm [shape: bf16[784,256], index: 3, kind: input, shape index: {}]   ;;  %s2567_s4 = inlined_call_operand.hbm [shape: bf16[256,256], index: 4, kind: input, shape index: {}]   ;;  %s2568_s5 = inlined_call_operand.vmem [shape: f32[1,256], index: 5, kind: input, shape index: {}]   ;;  %s2569_s6 = inlined_call_operand.vmem [shape: f32[1,256], index: 6, kind: input, shape index: {}]   ;;  %s2570_s7 = inlined_call_operand.<no memory space> [shape: f32[1,1], index: 7, kind: input, shape index: {}]   ;;  %s2571_s8 = inlined_call_operand.hbm [shape: f32[2,1,16], index: 8, kind: output, shape index: {}]  }
   0x1   :  { %2576 = sst [smem:[#allocation13_spill]] %s2566_s3  ;;  %v13_v0 = vstv %s2570_s7 }
   0x2   :  { %14 = vst [vmem:[#allocation2] sm:$0x1] %v13_v0 }
   0x3   :  { %15 = vsyncpa [#allocation4], 0 }
   0x4   :  { %17 = vsyncpa [#allocation4 + $0x1], 0 }
   0x5   :  { %18 = vsyncpa [#allocation7], 0 }
   0x6   :  { %19 = vsyncpa [#allocation5], 0 }
   0x7   :  { %21 = vsyncpa [#allocation5 + $0x1], 0  ;;  %s2327_s29 = smov 0   ;;  %s2329_s30 = smov 0  }
   0x8   :  { %s2331_s9 = smov 0   ;;  %s2333_s10 = smov 0  }
   0x9 LB: > { %s2348_s7 = sadd.s32 4294967295, %s2267_s10   ;;  %s1698_s11 = sadd.s32 4294967294, %s2267_s10   ;;  %s2267_s10 = sphi %s2333_s10, %s2595_s10   ;;  %s2263_s9 = sphi %s2331_s9, %s2594_s9   ;;  %s2259_s30 = sphi %s2329_s30, %s2593_s30   ;;  %s2255_s29 = sphi %s2327_s29, %s2592_s29  }
   0xa   : > { %p47_p0 = scmp.ne.s32.totalorder %s2259_s30, %s2255_s29  ;;  %p2572_p1 = scmp.eq.s32.totalorder %s2348_s7, 0 }
   0xb   : > { %p229_p3 = scmp.eq.s32.totalorder %s1698_s11, 1  ;;  %p1699_p5 = scmp.ge.s32.totalorder %s2267_s10, 1 }
   0xc   : > { %p2357_p4 = por %p2572_p1, %p47_p0  ;;  %p236_p7 = scmp.lt.s32.totalorder %s2267_s10, 3 }
   0xd   : > { %p2362_p6 = por %p229_p3, %p47_p0  ;;  %s2269_s15 = smov [#allocation6]  }
   0xe   : > { %s2577_s12 = scalar_select %p2357_p4, 1, 0 }
   0xf   : > { %s2578_s13 = scalar_select %p2362_p6, 1, 0 }
  0x10   : > { %p2367_p8 = pnand %p1699_p5, %p236_p7  ;;  %s251_s16 = sshll.u32 %s2269_s15, 4  ;;  %s252_s16 = int_to_ptr.vmem [resolvable:$true] %s251_s16 }
  0x11   : > { %s2270_s18 = smov [#allocation8]   ;;  %s2130_s20 = scalar_lea.vmem %s252_s16, 12544 }
  0x12   : > { %s2579_s14 = scalar_select %p2367_p8, 1, 0 }
  0x13   : > { %p1862_p9 = pneg %p2367_p8  ;;  %s264_s19 = sshll.u32 %s2270_s18, 4  ;;  %s265_s19 = int_to_ptr.vmem [resolvable:$true] %s264_s19 }
  0x14   : > { %p2131_p13 = scmp.ne.s32.totalorder %s252_s16, %s2130_s20  ;;  %p2138_p5 = scmp.lt.s32.totalorder %s252_s16, %s252_s16 }
  0x15   : > { %p2376_p11 = pnand %p1862_p9, %p2572_p1  ;;  %p2139_p7 = scmp.lt.s32.totalorder %s2130_s20, %s2130_s20 }
  0x17   : > { %p2121_p12 = pneg %p2376_p11  ;;  %p2140_p10 = por %p2139_p7, %p2138_p5 }
  0x19   : > { %p2133_p0 = pnand %p2131_p13, %p2121_p12 }
  0x1b   : > { %p2134_p3 = pneg %p2133_p0 }
  0x1d   : > { %p2141_p9 = pnand %p2140_p10, %p2134_p3 }
  0x1f   : > { %2144 = shalt.err (!%p2141_p9)
}
  0x20   : > { %s2271_s21 = smov 128   ;;  %s2272_s22 = smov 8  }
  0x21   : > { %s2581_s3 = sld [smem:[#allocation13_spill]]  ;;  %s2156_s25 = scalar_lea.vmem %s265_s19, 4096 }
  0x22   : > { %p2157_p1 = scmp.ne.s32.totalorder %s265_s19, %s2156_s25  ;;  %p2164_p2 = scmp.lt.s32.totalorder %s265_s19, %s265_s19 }
  0x23   : > { %p2165_p6 = scmp.lt.s32.totalorder %s2156_s25, %s2156_s25 }
  0x24   : > { %p2159_p13 = pnand %p2157_p1, %p2121_p12 }
  0x25   : > { %p2166_p5 = por %p2165_p6, %p2164_p2 }
  0x26   : > { %p2160_p0 = pneg %p2159_p13 }
  0x27   : > { %1865 = dma.hbm_to_vmem [thread:$0]  (!%p2376_p11), %s2581_s3, 12544, %s252_s16, [#allocation7], %s2271_s21, %s2271_s21, %s2272_s22  }
  0x28   : > { %p2167_p10 = pnand %p2166_p5, %p2160_p0 }
  0x2a   : > { %2170 = shalt.err (!%p2167_p10)
}
  0x2b   : > { %1868 = dma.hbm_to_vmem [thread:$0]  (!%p2376_p11), %s2567_s4, 4096, %s265_s19, [#allocation7], %s2271_s21, %s2271_s21, %s2272_s22  }
  0x2c   : > { %s2399_s28 = sadd.s32 1, %s2267_s10   ;;  %s34_s11 = sadd.s32 1, %s2263_s9 }
  0x2d   : > { %s31_s15 = ssub.s32 %s2267_s10, %s2399_s28  ;;  %p41_p1 = scmp.ne.s32.totalorder %s2263_s9, %s2259_s30 }
  0x2e   : > { %p32_p2 = scmp.eq.s32.totalorder %s31_s15, 0  ;;  %p42_p6 = scmp.eq.s32.totalorder %s2267_s10, 0 }
  0x2f   : > { %p2582_p12 = scmp.eq.s32.totalorder %s2348_s7, 1  ;;  %p1879_p7 = scmp.lt.s32.totalorder %s2267_s10, 2 }
  0x30   : > { %s2415_s17 = scalar_select %p32_p2, %s2263_s9, %s34_s11  }
  0x31   : > { %p2409_p3 = por %p2582_p12, %p41_p1  ;;  %p43_p9 = por %p42_p6, %p41_p1 }
  0x32   : > { %s287_s18 = sand.u32 1, %s2263_s9   ;;  %s1848_s19 = smul.u32 1792, %s2267_s10 }
  0x33   : > { %s2583_s16 = scalar_select %p2409_p3, 1, 0 }
  0x34   : > { %s1847_s20 = smul.u32 112, %s287_s18  ;;  %p2419_p11 = pnand %p1879_p7, %p43_p9 }
  0x35   : > { %s2426_s24 = scalar_lea.hbm %s2563_s0, %s1848_s19  ;;  %s2430_s27 = scalar_lea.sflag [#allocation4], %s287_s18 }
  0x36   : > { %s291_s25 = scalar_lea.vmem [#allocation3], %s1847_s20  ;;  %s2171_s11 = scalar_lea.hbm %s2426_s24, 1792 }
  0x37   : > { %s299_s26 = sshll.u32 %s291_s25, 4  ;;  %p2172_p13 = scmp.ne.s32.totalorder %s2426_s24, %s2171_s11  ;;  %s2428_s26 = int_to_ptr.vmem [resolvable:$true] %s299_s26 }
  0x38   : > { %p2173_p0 = pneg %p2419_p11  ;;  %s2176_s19 = scalar_lea.hbm %s2563_s0, 3584 }
  0x39   : > { %p2177_p1 = scmp.lt.s32.totalorder %s2426_s24, %s2563_s0  ;;  %p2178_p2 = scmp.lt.s32.totalorder %s2176_s19, %s2171_s11 }
  0x3a   : > { %p2174_p5 = pnand %p2173_p0, %p2172_p13 }
  0x3b   : > { %p2179_p6 = por %p2178_p2, %p2177_p1 }
  0x3c   : > { %p2175_p10 = pneg %p2174_p5 }
  0x3e   : > { %p2180_p12 = pnand %p2179_p6, %p2175_p10 }
  0x40   : > { %2183 = shalt.err (!%p2180_p12)
}
  0x41   : > { %s2184_s18 = scalar_lea.vmem %s2428_s26, 1792  ;;  %s2273_s20 = smov [#allocation3]  }
  0x42   : > { %p2185_p7 = scmp.ne.s32.totalorder %s2428_s26, %s2184_s18  ;;  %s2189_s25 = sshll.u32 %s2273_s20, 4  ;;  %s2190_s25 = int_to_ptr.vmem [resolvable:$false] %s2189_s25 }
  0x43   : > { %s2191_s15 = scalar_lea.vmem %s2190_s25, 3584  ;;  %p2192_p5 = scmp.lt.s32.totalorder %s2428_s26, %s2190_s25 }
  0x44   : > { %p2187_p9 = pnand %p2185_p7, %p2173_p0  ;;  %p2193_p3 = scmp.lt.s32.totalorder %s2191_s15, %s2184_s18 }
  0x46   : > { %p2188_p13 = pneg %p2187_p9  ;;  %p2194_p4 = por %p2193_p3, %p2192_p5 }
  0x48   : > { %p2195_p8 = pnand %p2194_p4, %p2188_p13 }
  0x4a   : > { %2198 = shalt.err (!%p2195_p8)
}
  0x4b   : > { %s2274_s3 = smov 896   ;;  %s2275_s11 = smov 56  }
  0x4c   : > { %1872 = dma.hbm_to_vmem [thread:$0]  (!%p2419_p11), %s2426_s24, 1792, %s2428_s26, %s2430_s27, %s2274_s3, %s2274_s3, %s2275_s11  }
  0x4d   : > { %p2585_p0 = scmp.ne.s32.totalorder %s2579_s14, 0 }
  0x4e   : > { %s2454_s22 = sand.u32 (!%p2585_p0), 1, %s2259_s30   ;;  %p2586_p4 = scmp.ne.s32.totalorder (!%p2585_p0), %s2577_s12, 0 }
  0x4f   : > { %320 = sbr.rel (%p2585_p0) target bundleno = 922 (0x39a), region = 52  ;;  %s323_s23 = scalar_lea.sflag (!%p2585_p0), [#allocation4], %s2454_s22 }
  0x50   : > { %s1849_s19 = smul.u32 (!%p2585_p0), 112, %s2454_s22 }
  0x52   : > { %s2458_s18 = scalar_lea.vmem (!%p2585_p0), [#allocation3], %s1849_s19 }
  0x54   : > { %2242 = dma.done.wait (%p2586_p4), %s323_s23, 1792  }
  0x55   : > { %2244 = vsyncadd (%p2586_p4), %s323_s23, 4294965504  ;;  %p2587_p8 = scmp.eq.s32.totalorder %s2348_s7, 0 }
  0x57   : > { %2246 = dma.done.wait (%p2587_p8), [#allocation7], 16640   ;;  %p2588_p3 = pmov %p2587_p8 }
  0x58   : > { %s1709_s14 = sshll.u32 %s2348_s7, 1  ;;  %v2276_v1 = vmov 0   ;;  %v2277_v2 = vmov 0.0   ;;  %v396_v5 = vld [vmem:[%s2565_s2 + $0x18] sm:$0xff]  ;;  %v395_v6 = vld [vmem:[%s2565_s2 + $0x10] sm:$0xff]  ;;  %v394_v7 = vld [vmem:[%s2565_s2 + $0x8] sm:$0xff]  ;;  %v379_v49 = vlaneseq }
  0x59   : > { %2248 = vsyncadd (%p2588_p3), [#allocation7], 4294950656  ;;  %1923 = vset.pattern.permute.xlu0 %v2276_v1  ;;  %p373_p11 = scmp.lt.s32.totalorder %s1709_s14, 3  ;;  %468 = vmatprep.mubr.f32.mxu1 %v2277_v2  ;;  %v393_v8 = vld [vmem:[%s2565_s2] sm:$0xff]  ;;  %v1929_v11 = vld [vmem:[#allocation6 + $0x170] ss:$8 sps:$4 sm:$0xff]  }
  0x5a   : > { %432 = vmatprep.subr.mxu1 %v396_v5  ;;  %v1926_v9 = vld [vmem:[#allocation6 + $0x74] ss:$8 sps:$4 sm:$0xff]   ;;  %v1933_v13 = vld [vmem:[#allocation6 + $0x164] ss:$8 sps:$4 sm:$0xff]   ;;  %v1935_v14 = vld [vmem:[#allocation6 + $0x160] ss:$8 sps:$4 sm:$0xff]  }
  0x5b   : > { %s2597_s14 = smov (!%p373_p11, %s1709_s14), 3  ;;  %433 = vmatpush1.msra.mxu1 %v395_v6  ;;  %v1927_v10 = vld [vmem:[#allocation6 + $0x174] ss:$8 sps:$4 sm:$0xff]   ;;  %v1941_v16 = vld [vmem:[#allocation6 + $0x150] ss:$8 sps:$4 sm:$0xff]   ;;  %v2493_v53 = vand.u32 127, %v379_v49 }
  0x5c   : > { %s1710_s21 = sshll.u32 %s2597_s14, 3  ;;  %434 = vmatprep.subr.mxu1 %v394_v7  ;;  %v1560_v12 = vld [vmem:[#allocation2] sm:$0x1]  ;;  %1136 = vmatprep.subr.bf16.mxu0 %v1927_v10  ;;  %v1945_v17 = vld [vmem:[#allocation6 + $0x144] ss:$8 sps:$4 sm:$0xff]   ;;  %vm397_vm0 = vcmask 130048  }
  0x5d   : > { %s376_s26 = scalar_lea.vmem %s2564_s1, %s1710_s21  ;;  %435 = vmatpush1.msra.mxu1 %v393_v8  ;;  %1137 = vmatpush1.bf16.msra.mxu0 %v1929_v11  ;;  %v1939_v15 = vld [vmem:[#allocation6 + $0x154] ss:$8 sps:$4 sm:$0xff]   ;;  %v1947_v18 = vld [vmem:[#allocation6 + $0x140] ss:$8 sps:$4 sm:$0xff]   ;;  %v1953_v20 = vld [vmem:[#allocation6 + $0x130] ss:$8 sps:$4 sm:$0xff]  }
  0x5e   : > { %v381_v3 = vld [vmem:[%s376_s26] sm:$0xff]  ;;  %v382_v4 = vld [vmem:[%s376_s26 + $0x8] sm:$0xff]  ;;  %1093 = vmatprep.subr.bf16.mxu1 %v1926_v9  ;;  %1138 = vmatprep.subr.bf16.mxu0 %v1933_v13  ;;  %v1965_v24 = vld [vmem:[#allocation6 + $0x110] ss:$8 sps:$4 sm:$0xff]   ;;  %s1844_s12 = sshll.u32 %s2348_s7, 4  ;;  %s370_s26 = scalar_lea.vmem [#allocation9], %s2454_s22 }
  0x5f   : > { %384 = vperm.xlu0 %1923, %v381_v3   ;;  %v1951_v19 = vld [vmem:[#allocation6 + $0x134] ss:$8 sps:$4 sm:$0xff]   ;;  %v1957_v21 = vld [vmem:[#allocation6 + $0x124] ss:$8 sps:$4 sm:$0xff]   ;;  %v1959_v22 = vld [vmem:[#allocation6 + $0x120] ss:$8 sps:$4 sm:$0xff]   ;;  %s2526_s15 = scalar_lea.hbm %s2571_s8, %s1844_s12 }
  0x60   : > { %v1963_v23 = vld [vmem:[#allocation6 + $0x114] ss:$8 sps:$4 sm:$0xff]   ;;  %v1969_v25 = vld [vmem:[#allocation6 + $0x104] ss:$8 sps:$4 sm:$0xff]   ;;  %v1971_v26 = vld [vmem:[#allocation6 + $0x100] ss:$8 sps:$4 sm:$0xff]  }
  0x61   : > { %1139 = vmatpush1.bf16.msra.mxu0 %v1935_v14  ;;  %v1975_v27 = vld [vmem:[#allocation6 + $0x1f4] ss:$8 sps:$4 sm:$0xff]   ;;  %v1977_v28 = vld [vmem:[#allocation6 + $0x1f0] ss:$8 sps:$4 sm:$0xff]   ;;  %v1981_v29 = vld [vmem:[#allocation6 + $0x1e4] ss:$8 sps:$4 sm:$0xff]  }
  0x62   : > { %1140 = vmatprep.subr.bf16.mxu0 %v1939_v15  ;;  %v1983_v30 = vld [vmem:[#allocation6 + $0x1e0] ss:$8 sps:$4 sm:$0xff]   ;;  %v1987_v31 = vld [vmem:[#allocation6 + $0x1d4] ss:$8 sps:$4 sm:$0xff]   ;;  %v1989_v32 = vld [vmem:[#allocation6 + $0x1d0] ss:$8 sps:$4 sm:$0xff]  }
  0x63   : > { %387 = vperm.xlu0 %1923, %v382_v4   ;;  %v1993_v33 = vld [vmem:[#allocation6 + $0x1c4] ss:$8 sps:$4 sm:$0xff]   ;;  %v1995_v34 = vld [vmem:[#allocation6 + $0x1c0] ss:$8 sps:$4 sm:$0xff]   ;;  %v1999_v35 = vld [vmem:[#allocation6 + $0x1b4] ss:$8 sps:$4 sm:$0xff]  }
  0x64   : > { %v2001_v36 = vld [vmem:[#allocation6 + $0x1b0] ss:$8 sps:$4 sm:$0xff]   ;;  %v2005_v37 = vld [vmem:[#allocation6 + $0x1a4] ss:$8 sps:$4 sm:$0xff]   ;;  %v2007_v38 = vld [vmem:[#allocation6 + $0x1a0] ss:$8 sps:$4 sm:$0xff]  }
  0x65   : > { %1141 = vmatpush1.bf16.msra.mxu0 %v1941_v16  ;;  %v2011_v39 = vld [vmem:[#allocation6 + $0x194] ss:$8 sps:$4 sm:$0xff]   ;;  %v2013_v40 = vld [vmem:[#allocation6 + $0x190] ss:$8 sps:$4 sm:$0xff]   ;;  %v2017_v41 = vld [vmem:[#allocation6 + $0x184] ss:$8 sps:$4 sm:$0xff]  }
  0x66   : > { %1142 = vmatprep.subr.bf16.mxu0 %v1945_v17  ;;  %v484_v42 = vld [vmem:[%s2458_s18 + $0x18] sm:$0xff]  ;;  %v491_v43 = vld [vmem:[%s2458_s18 + $0x50] sm:$0xff]  ;;  %v490_v47 = vld [vmem:[%s2458_s18 + $0x48] sm:$0xff]  ;;  %s1601_s27 = sshll.u32 %s370_s26, 4  ;;  %vm1583_vm11 = vcmask 130112   ;;  %vm1586_vm12 = vcmask 122880   ;;  %s1602_s27 = int_to_ptr.vmem [resolvable:$true] %s1601_s27 }
  0x67   : > { %1563 = vperm.xlu0 %1923, %v1560_v12   ;;  %v2019_v44 = vld [vmem:[#allocation6 + $0x180] ss:$8 sps:$4 sm:$0xff]   ;;  %v498_v45 = vpack.c.bf16 %v491_v43, %v484_v42  ;;  %v2067_v51 = vld [vmem:[#allocation6 + $0x304] ss:$8 sps:$4 sm:$0xff]   ;;  %v1924_v57 = vld [vmem:[#allocation6 + $0x70] ss:$8 sps:$4 sm:$0xff]  }
  0x68   : > { %v483_v46 = vld [vmem:[%s2458_s18 + $0x10] sm:$0xff]  ;;  %v494_v54 = vld [vmem:[%s2458_s18 + $0x68] sm:$0xff]  ;;  %v489_v60 = vld [vmem:[%s2458_s18 + $0x40] sm:$0xff]  ;;  %s1589_s3 = scalar_lea.sflag [#allocation5], %s2454_s22  ;;  %s2199_s11 = scalar_lea.vmem %s1602_s27, 16 }
  0x69   : > { %1143 = vmatpush1.bf16.msra.mxu0 %v1947_v18  ;;  %1168 = vmatprep.mubr.bf16.mxu0 %v498_v45  ;;  %v497_v48 = vpack.c.bf16 %v490_v47, %v483_v46  ;;  %v2065_v50 = vld [vmem:[#allocation6 + $0x300] ss:$8 sps:$4 sm:$0xff]   ;;  %v1932_v58 = vld [vmem:[#allocation6 + $0x64] ss:$8 sps:$4 sm:$0xff]   ;;  %v1936_v4 = vld [vmem:[#allocation6 + $0x50] ss:$8 sps:$4 sm:$0xff]   ;;  %p2200_p10 = scmp.ne.s32.totalorder %s1602_s27, %s2199_s11 }
  0x6a   : > { %1144 = vmatprep.subr.bf16.mxu0 %v1951_v19  ;;  %v487_v52 = vld [vmem:[%s2458_s18 + $0x30] sm:$0xff]  ;;  %v482_v59 = vld [vmem:[%s2458_s18 + $0x8] sm:$0xff]  ;;  %p2589_p1 = scmp.ne.s32.totalorder %s2583_s16, 0  ;;  %s2278_s7 = smov [#allocation9]  }
  0x6b   : > { %v501_v55 = vpack.c.bf16 %v494_v54, %v487_v52  ;;  %v1930_v63 = vld [vmem:[#allocation6 + $0x60] ss:$8 sps:$4 sm:$0xff]   ;;  %v496_v0 = vpack.c.bf16 %v489_v60, %v482_v59  ;;  %v1944_v5 = vld [vmem:[#allocation6 + $0x44] ss:$8 sps:$4 sm:$0xff]   ;;  %v1950_v7 = vld [vmem:[#allocation6 + $0x34] ss:$8 sps:$4 sm:$0xff]  }
  0x6c   : > { %v1942_v6 = vld [vmem:[#allocation6 + $0x40] ss:$8 sps:$4 sm:$0xff]   ;;  %v1948_v8 = vld [vmem:[#allocation6 + $0x30] ss:$8 sps:$4 sm:$0xff]   ;;  %v1956_v9 = vld [vmem:[#allocation6 + $0x24] ss:$8 sps:$4 sm:$0xff]   ;;  %p2201_p2 = pnand %p2200_p10, %p2589_p1 }
  0x6d   : > { %1145 = vmatpush1.bf16.msra.mxu0 %v1953_v20  ;;  %v1954_v10 = vld [vmem:[#allocation6 + $0x20] ss:$8 sps:$4 sm:$0xff]   ;;  %v1962_v11 = vld [vmem:[#allocation6 + $0x14] ss:$8 sps:$4 sm:$0xff]   ;;  %v1968_v12 = vld [vmem:[#allocation6 + $0x4] ss:$8 sps:$4 sm:$0xff]  }
  0x6e   : > { %1146 = vmatprep.subr.bf16.mxu0 %v1957_v21  ;;  %v1966_v13 = vld [vmem:[#allocation6] ss:$8 sps:$4 sm:$0xff]   ;;  %v1974_v14 = vld [vmem:[#allocation6 + $0xf4] ss:$8 sps:$4 sm:$0xff]   ;;  %v1972_v15 = vld [vmem:[#allocation6 + $0xf0] ss:$8 sps:$4 sm:$0xff]   ;;  %p2202_p6 = pneg %p2201_p2 }
  0x6f   : > { %v1980_v16 = vld [vmem:[#allocation6 + $0xe4] ss:$8 sps:$4 sm:$0xff]   ;;  %v1978_v17 = vld [vmem:[#allocation6 + $0xe0] ss:$8 sps:$4 sm:$0xff]   ;;  %v1986_v18 = vld [vmem:[#allocation6 + $0xd4] ss:$8 sps:$4 sm:$0xff]  }
  0x70   : > { %v1984_v19 = vld [vmem:[#allocation6 + $0xd0] ss:$8 sps:$4 sm:$0xff]   ;;  %v1992_v20 = vld [vmem:[#allocation6 + $0xc4] ss:$8 sps:$4 sm:$0xff]   ;;  %v1990_v21 = vld [vmem:[#allocation6 + $0xc0] ss:$8 sps:$4 sm:$0xff]  }
  0x71   : > { %1147 = vmatpush1.bf16.msra.mxu0 %v1959_v22  ;;  %v1998_v22 = vld [vmem:[#allocation6 + $0xb4] ss:$8 sps:$4 sm:$0xff]   ;;  %v2031_v42 = vld [vmem:[#allocation6 + $0x244] ss:$8 sps:$4 sm:$0xff]   ;;  %v2029_v43 = vld [vmem:[#allocation6 + $0x240] ss:$8 sps:$4 sm:$0xff]  }
  0x72   : > { %1148 = vmatprep.subr.bf16.mxu0 %v1963_v23  ;;  %v1996_v23 = vld [vmem:[#allocation6 + $0xb0] ss:$8 sps:$4 sm:$0xff]   ;;  %v2037_v46 = vld [vmem:[#allocation6 + $0x224] ss:$8 sps:$4 sm:$0xff]   ;;  %v2035_v47 = vld [vmem:[#allocation6 + $0x220] ss:$8 sps:$4 sm:$0xff]  }
  0x73   : > { %v2032_v45 = vld [vmem:[#allocation6 + $0x230] ss:$8 sps:$4 sm:$0xff]   ;;  %v2041_v52 = vld [vmem:[#allocation6 + $0x200] ss:$8 sps:$4 sm:$0xff]   ;;  %v2046_v54 = vld [vmem:[#allocation6 + $0x2f4] ss:$8 sps:$4 sm:$0xff]  }
  0x74   : > { %v2050_v59 = vld [vmem:[#allocation6 + $0x2d0] ss:$8 sps:$4 sm:$0xff]   ;;  %v2055_v60 = vld [vmem:[#allocation6 + $0x2c4] ss:$8 sps:$4 sm:$0xff]   ;;  %s2203_s19 = sshll.u32 %s2278_s7, 4  ;;  %s2204_s19 = int_to_ptr.vmem [resolvable:$false] %s2203_s19 }
  0x75   : > { %1149 = vmatpush1.bf16.msra.mxu0 %v1965_v24  ;;  %v2004_v24 = vld [vmem:[#allocation6 + $0xa4] ss:$8 sps:$4 sm:$0xff]   ;;  %s2205_s23 = scalar_lea.vmem %s2204_s19, 32  ;;  %p2206_p12 = scmp.lt.s32.totalorder %s1602_s27, %s2204_s19 }
  0x76   : > { %1150 = vmatprep.subr.bf16.mxu0 %v1969_v25  ;;  %v2002_v25 = vld [vmem:[#allocation6 + $0xa0] ss:$8 sps:$4 sm:$0xff]   ;;  %p2207_p7 = scmp.lt.s32.totalorder %s2205_s23, %s2199_s11 }
  0x78   : > { %p2208_p9 = por %p2207_p7, %p2206_p12 }
  0x79   : > { %1151 = vmatpush1.bf16.msra.mxu0 %v1971_v26  ;;  %v2010_v26 = vld [vmem:[#allocation6 + $0x94] ss:$8 sps:$4 sm:$0xff]  }
  0x7a   : > { %1152 = vmatprep.subr.bf16.mxu0 %v1975_v27  ;;  %v2008_v27 = vld [vmem:[#allocation6 + $0x90] ss:$8 sps:$4 sm:$0xff]   ;;  %p2209_p13 = pnand %p2208_p9, %p2202_p6 }
  0x7d   : > { %1153 = vmatpush2.bf16.msra.mxu0 %v1977_v28  ;;  %v2016_v28 = vld [vmem:[#allocation6 + $0x84] ss:$8 sps:$4 sm:$0xff]  }
  0x7e   : > { %1154 = vmatprep.subr.bf16.mxu0 %v1981_v29  ;;  %v2014_v29 = vld [vmem:[#allocation6 + $0x80] ss:$8 sps:$4 sm:$0xff]  }
  0x81   : > { %1155 = vmatpush2.bf16.msra.mxu0 %v1983_v30  ;;  %v481_v30 = vld [vmem:[%s2458_s18] sm:$0xff] }
  0x82   : > { %1156 = vmatprep.subr.bf16.mxu0 %v1987_v31  ;;  %v488_v31 = vld [vmem:[%s2458_s18 + $0x38] sm:$0xff] }
  0x85   : > { %1157 = vmatpush2.bf16.msra.mxu0 %v1989_v32  ;;  %v2022_v32 = vld [vmem:[#allocation6 + $0x274] ss:$8 sps:$4 sm:$0xff]  }
  0x86   : > { %1158 = vmatprep.subr.bf16.mxu0 %v1993_v33  ;;  %v486_v33 = vld [vmem:[%s2458_s18 + $0x28] sm:$0xff] }
  0x89   : > { %1159 = vmatpush2.bf16.msra.mxu0 %v1995_v34  ;;  %v493_v34 = vld [vmem:[%s2458_s18 + $0x60] sm:$0xff] }
  0x8a   : > { %1160 = vmatprep.subr.bf16.mxu0 %v1999_v35  ;;  %v495_v35 = vpack.c.bf16 %v488_v31, %v481_v30  ;;  %v2101_v30 = vld [vmem:[#allocation8 + $0xd0] ss:$8 sps:$4 sm:$0xff]   ;;  %v2106_v31 = vld [vmem:[#allocation8 + $0xc4] ss:$8 sps:$4 sm:$0xff]  }
  0x8d   : > { %1161 = vmatpush2.bf16.msra.mxu0 %v2001_v36  ;;  %v2020_v36 = vld [vmem:[#allocation6 + $0x270] ss:$8 sps:$4 sm:$0xff]  }
  0x8e   : > { %1162 = vmatprep.subr.bf16.mxu0 %v2005_v37  ;;  %v500_v37 = vpack.c.bf16 %v493_v34, %v486_v33  ;;  %v2109_v33 = vld [vmem:[#allocation8 + $0xb4] ss:$8 sps:$4 sm:$0xff]   ;;  %v2107_v34 = vld [vmem:[#allocation8 + $0xb0] ss:$8 sps:$4 sm:$0xff]  }
  0x91   : > { %1163 = vmatpush2.bf16.msra.mxu0 %v2007_v38  ;;  %v2025_v38 = vld [vmem:[#allocation6 + $0x264] ss:$8 sps:$4 sm:$0xff]  }
  0x92   : > { %1164 = vmatprep.subr.bf16.mxu0 %v2011_v39  ;;  %v2023_v39 = vld [vmem:[#allocation6 + $0x260] ss:$8 sps:$4 sm:$0xff]  }
  0x95   : > { %1165 = vmatpush2.bf16.msra.mxu0 %v2013_v40  ;;  %v2028_v40 = vld [vmem:[#allocation6 + $0x254] ss:$8 sps:$4 sm:$0xff]  }
  0x96   : > { %1166 = vmatprep.subr.bf16.mxu0 %v2017_v41  ;;  %v2026_v41 = vld [vmem:[#allocation6 + $0x250] ss:$8 sps:$4 sm:$0xff]  }
  0x99   : > { %1167 = vmatpush2.bf16.msra.mxu0 %v2019_v44  ;;  %v2034_v44 = vld [vmem:[#allocation6 + $0x234] ss:$8 sps:$4 sm:$0xff]  }
  0x9a   : > { %1236 = vmatprep.subr.bf16.mxu0 %v2067_v51  ;;  %v2043_v51 = vld [vmem:[#allocation6 + $0x204] ss:$8 sps:$4 sm:$0xff]  }
  0x9c   : > { %1169 = vmatmul.mubr.bf16.vlgmr.msra.gmra.mxu0 %v497_v48  ;;  %v2040_v48 = vld [vmem:[#allocation6 + $0x214] ss:$8 sps:$4 sm:$0xff]  }
  0x9d   : > { %1254 = vmatprep.mubr.bf16.mxu0 %v2276_v1  ;;  %1237 = vmatpush1.bf16.msra.mxu0 %v2065_v50  ;;  %v1938_v1 = vld [vmem:[#allocation6 + $0x54] ss:$8 sps:$4 sm:$0xff]   ;;  %v2038_v50 = vld [vmem:[#allocation6 + $0x210] ss:$8 sps:$4 sm:$0xff]  }
  0xa4   : > { %1811 = vmatmul.mubr.msk.bf16.vlgmr.msra.gmra.mxu0 %vm397_vm0, %v501_v55  ;;  %v2044_v55 = vld [vmem:[#allocation6 + $0x2f0] ss:$8 sps:$4 sm:$0xff]  }
  0xda   : > { %v385_v56 = vpop.permute.xlu0 %384 }
  0xdb   : > { %vm389_vm1 = vcmp.eq.s32.totalorder %v2493_v53, %v385_v56  ;;  %v2049_v56 = vld [vmem:[#allocation6 + $0x2e4] ss:$8 sps:$4 sm:$0xff]  }
  0xdc   : > { %v391_v61 = vsel %vm389_vm1, 1.0, %v2277_v2 }
  0xdd   : > { %1711 = vmatmul.mubr.msk.f32.vlgmr.msra.gmra.mxu1 %vm397_vm0, %v391_v61  ;;  %v2053_v61 = vld [vmem:[#allocation6 + $0x2c0] ss:$8 sps:$4 sm:$0xff]  }
  0xde   : > { %1094 = vmatpush1.bf16.msra.mxu1 %v1924_v57  ;;  %v388_v62 = vpop.permute.xlu0 %387  ;;  %474 = vmatprep.mubr.f32.mxu1 %v2277_v2  ;;  %v2047_v57 = vld [vmem:[#allocation6 + $0x2e0] ss:$8 sps:$4 sm:$0xff]  }
  0xdf   : > { %vm390_vm2 = vcmp.eq.s32.totalorder %v2493_v53, %v388_v62  ;;  %1095 = vmatprep.subr.bf16.mxu1 %v1932_v58  ;;  %v2052_v58 = vld [vmem:[#allocation6 + $0x2d4] ss:$8 sps:$4 sm:$0xff]  }
  0xe0   : > { %v392_v3 = vsel %vm390_vm2, 1.0, %v2277_v2  ;;  %v1960_v2 = vld [vmem:[#allocation6 + $0x10] ss:$8 sps:$4 sm:$0xff]   ;;  %v2058_v62 = vld [vmem:[#allocation6 + $0x2b4] ss:$8 sps:$4 sm:$0xff]  }
  0xe1   : > { %1712 = vmatmul.mubr.msk.f32.gmra.mxu1 %vm397_vm0, %v392_v3  ;;  %v2064_v3 = vld [vmem:[#allocation6 + $0x294] ss:$8 sps:$4 sm:$0xff]  }
  0xe2   : > { %1096 = vmatpush1.bf16.msra.mxu1 %v1930_v63  ;;  %1125 = vmatprep.mubr.bf16.mxu1 %v496_v0  ;;  %v2056_v63 = vld [vmem:[#allocation6 + $0x2b0] ss:$8 sps:$4 sm:$0xff]   ;;  %v2061_v0 = vld [vmem:[#allocation6 + $0x2a4] ss:$8 sps:$4 sm:$0xff]  }
  0xe3   : > { %1097 = vmatprep.subr.bf16.mxu1 %v1938_v1  ;;  %v2059_v1 = vld [vmem:[#allocation6 + $0x2a0] ss:$8 sps:$4 sm:$0xff]  }
  0xe6   : > { %1098 = vmatpush1.bf16.msra.mxu1 %v1936_v4  ;;  %v2062_v4 = vld [vmem:[#allocation6 + $0x290] ss:$8 sps:$4 sm:$0xff]  }
  0xe7   : > { %1099 = vmatprep.subr.bf16.mxu1 %v1944_v5  ;;  %v2070_v5 = vld [vmem:[#allocation6 + $0x284] ss:$8 sps:$4 sm:$0xff]  }
  0xea   : > { %1100 = vmatpush1.bf16.msra.mxu1 %v1942_v6  ;;  %v2068_v6 = vld [vmem:[#allocation6 + $0x280] ss:$8 sps:$4 sm:$0xff]  }
  0xeb   : > { %1101 = vmatprep.subr.bf16.mxu1 %v1950_v7  ;;  %v485_v7 = vld [vmem:[%s2458_s18 + $0x20] sm:$0xff] }
  0xee   : > { %1102 = vmatpush1.bf16.msra.mxu1 %v1948_v8  ;;  %v492_v8 = vld [vmem:[%s2458_s18 + $0x58] sm:$0xff] }
  0xef   : > { %1103 = vmatprep.subr.bf16.mxu1 %v1956_v9  ;;  %v499_v9 = vpack.c.bf16 %v492_v8, %v485_v7 }
  0xf2   : > { %1104 = vmatpush1.bf16.msra.mxu1 %v1954_v10  ;;  %v2071_v10 = vld [vmem:[#allocation8 + $0x70] ss:$8 sps:$4 sm:$0xff]  }
  0xf3   : > { %1105 = vmatprep.subr.bf16.mxu1 %v1962_v11  ;;  %v2073_v11 = vld [vmem:[#allocation8 + $0x74] ss:$8 sps:$4 sm:$0xff]  }
  0xf4   : > { %1483 = vmatprep.subr.bf16.mxu0 %v2073_v11 }
  0xf5   : > { %1484 = vmatpush1.bf16.msra.mxu0 %v2071_v10 }
  0xf6   : > { %1106 = vmatpush1.bf16.msra.mxu1 %v1960_v2  ;;  %v2076_v2 = vld [vmem:[#allocation8 + $0x64] ss:$8 sps:$4 sm:$0xff]  }
  0xf7   : > { %1107 = vmatprep.subr.bf16.mxu1 %v1968_v12  ;;  %v2074_v12 = vld [vmem:[#allocation8 + $0x60] ss:$8 sps:$4 sm:$0xff]   ;;  %1485 = vmatprep.subr.bf16.mxu0 %v2076_v2 }
  0xf9   : > { %1486 = vmatpush1.bf16.msra.mxu0 %v2074_v12 }
  0xfa   : > { %1108 = vmatpush1.bf16.msra.mxu1 %v1966_v13  ;;  %v2079_v13 = vld [vmem:[#allocation8 + $0x54] ss:$8 sps:$4 sm:$0xff]  }
  0xfb   : > { %1109 = vmatprep.subr.bf16.mxu1 %v1974_v14  ;;  %v2077_v14 = vld [vmem:[#allocation8 + $0x50] ss:$8 sps:$4 sm:$0xff]   ;;  %1487 = vmatprep.subr.bf16.mxu0 %v2079_v13 }
  0xfd   : > { %1488 = vmatpush1.bf16.msra.mxu0 %v2077_v14 }
  0xfe   : > { %1110 = vmatpush2.bf16.msra.mxu1 %v1972_v15  ;;  %v2082_v15 = vld [vmem:[#allocation8 + $0x44] ss:$8 sps:$4 sm:$0xff]  }
  0xff   : > { %1111 = vmatprep.subr.bf16.mxu1 %v1980_v16  ;;  %v2080_v16 = vld [vmem:[#allocation8 + $0x40] ss:$8 sps:$4 sm:$0xff]   ;;  %1489 = vmatprep.subr.bf16.mxu0 %v2082_v15 }
 0x101   : > { %1490 = vmatpush1.bf16.msra.mxu0 %v2080_v16 }
 0x102   : > { %1112 = vmatpush2.bf16.msra.mxu1 %v1978_v17  ;;  %v2085_v17 = vld [vmem:[#allocation8 + $0x34] ss:$8 sps:$4 sm:$0xff]  }
 0x103   : > { %1113 = vmatprep.subr.bf16.mxu1 %v1986_v18  ;;  %v2083_v18 = vld [vmem:[#allocation8 + $0x30] ss:$8 sps:$4 sm:$0xff]   ;;  %1491 = vmatprep.subr.bf16.mxu0 %v2085_v17 }
 0x105   : > { %1492 = vmatpush1.bf16.msra.mxu0 %v2083_v18 }
 0x106   : > { %1114 = vmatpush2.bf16.msra.mxu1 %v1984_v19  ;;  %v2088_v19 = vld [vmem:[#allocation8 + $0x24] ss:$8 sps:$4 sm:$0xff]  }
 0x107   : > { %1115 = vmatprep.subr.bf16.mxu1 %v1992_v20  ;;  %v2086_v20 = vld [vmem:[#allocation8 + $0x20] ss:$8 sps:$4 sm:$0xff]   ;;  %1493 = vmatprep.subr.bf16.mxu0 %v2088_v19 }
 0x109   : > { %1494 = vmatpush1.bf16.msra.mxu0 %v2086_v20 }
 0x10a   : > { %1116 = vmatpush2.bf16.msra.mxu1 %v1990_v21  ;;  %v2091_v21 = vld [vmem:[#allocation8 + $0x14] ss:$8 sps:$4 sm:$0xff]  }
 0x10b   : > { %1117 = vmatprep.subr.bf16.mxu1 %v1998_v22  ;;  %v2089_v22 = vld [vmem:[#allocation8 + $0x10] ss:$8 sps:$4 sm:$0xff]   ;;  %1495 = vmatprep.subr.bf16.mxu0 %v2091_v21 }
 0x10d   : > { %1496 = vmatpush1.bf16.msra.mxu0 %v2089_v22 }
 0x10e   : > { %1118 = vmatpush2.bf16.msra.mxu1 %v1996_v23  ;;  %v2094_v23 = vld [vmem:[#allocation8 + $0x4] ss:$8 sps:$4 sm:$0xff]  }
 0x10f   : > { %1119 = vmatprep.subr.bf16.mxu1 %v2004_v24  ;;  %v2092_v24 = vld [vmem:[#allocation8] ss:$8 sps:$4 sm:$0xff]   ;;  %1497 = vmatprep.subr.bf16.mxu0 %v2094_v23 }
 0x111   : > { %1498 = vmatpush1.bf16.msra.mxu0 %v2092_v24 }
 0x112   : > { %1120 = vmatpush2.bf16.msra.mxu1 %v2002_v25  ;;  %v2097_v25 = vld [vmem:[#allocation8 + $0xf4] ss:$8 sps:$4 sm:$0xff]  }
 0x113   : > { %1121 = vmatprep.subr.bf16.mxu1 %v2010_v26  ;;  %v2095_v26 = vld [vmem:[#allocation8 + $0xf0] ss:$8 sps:$4 sm:$0xff]   ;;  %1499 = vmatprep.subr.bf16.mxu0 %v2097_v25  ;;  %v1314_v25 = vshrl.u32 %v379_v49, 7 }
 0x115   : > { %1500 = vmatpush2.bf16.msra.mxu0 %v2095_v26  ;;  %v1311_v26 = vld [vmem:[%s2568_s5] sm:$0x3] }
 0x116   : > { %1122 = vmatpush2.bf16.msra.mxu1 %v2008_v27  ;;  %v2100_v27 = vld [vmem:[#allocation8 + $0xe4] ss:$8 sps:$4 sm:$0xff]  }
 0x117   : > { %1123 = vmatprep.subr.bf16.mxu1 %v2016_v28  ;;  %v2098_v28 = vld [vmem:[#allocation8 + $0xe0] ss:$8 sps:$4 sm:$0xff]   ;;  %1501 = vmatprep.subr.bf16.mxu0 %v2100_v27  ;;  %v1315_v27 = vsub.s32 0, %v1314_v25 }
 0x119   : > { %1502 = vmatpush2.bf16.msra.mxu0 %v2098_v28  ;;  %v1319_v28 = vsub.s32 1, %v1314_v25 }
 0x11a   : > { %1124 = vmatpush2.bf16.msra.mxu1 %v2014_v29  ;;  %v2103_v29 = vld [vmem:[#allocation8 + $0xd4] ss:$8 sps:$4 sm:$0xff]  }
 0x11b   : > { %1179 = vmatprep.subr.bf16.mxu1 %v2022_v32  ;;  %1503 = vmatprep.subr.bf16.mxu0 %v2103_v29  ;;  %v2104_v32 = vld [vmem:[#allocation8 + $0xc0] ss:$8 sps:$4 sm:$0xff]   ;;  %v1316_v29 = vrot.slane %v1311_v26, %v1315_v27 }
 0x11d   : > { %1126 = vmatmul.mubr.bf16.vlgmr.msra.gmra.mxu1 %v495_v35  ;;  %1504 = vmatpush2.bf16.msra.mxu0 %v2101_v30  ;;  %v2112_v35 = vld [vmem:[#allocation8 + $0xa4] ss:$8 sps:$4 sm:$0xff]   ;;  %v1320_v30 = vrot.slane %v1311_v26, %v1319_v28 }
 0x11e   : > { %1180 = vmatpush1.bf16.msra.mxu1 %v2020_v36  ;;  %1211 = vmatprep.mubr.bf16.mxu1 %v500_v37  ;;  %v2110_v36 = vld [vmem:[#allocation8 + $0xa0] ss:$8 sps:$4 sm:$0xff]   ;;  %v2115_v37 = vld [vmem:[#allocation8 + $0x94] ss:$8 sps:$4 sm:$0xff]  }
 0x11f   : > { %1181 = vmatprep.subr.bf16.mxu1 %v2025_v38  ;;  %1505 = vmatprep.subr.bf16.mxu0 %v2106_v31  ;;  %v2113_v38 = vld [vmem:[#allocation8 + $0x90] ss:$8 sps:$4 sm:$0xff]  }
 0x121   : > { %1506 = vmatpush2.bf16.msra.mxu0 %v2104_v32 }
 0x122   : > { %1182 = vmatpush1.bf16.msra.mxu1 %v2023_v39  ;;  %1507 = vmatprep.subr.bf16.mxu0 %v2109_v33  ;;  %v2116_v39 = vld [vmem:[#allocation8 + $0x80] ss:$8 sps:$4 sm:$0xff]   ;;  %v1538_v33 = vld [vmem:[%s2569_s6] sm:$0x3] }
 0x123   : > { %1183 = vmatprep.subr.bf16.mxu1 %v2028_v40  ;;  %v2118_v40 = vld [vmem:[#allocation8 + $0x84] ss:$8 sps:$4 sm:$0xff]   ;;  %v1543_v49 = vrot.slane %v1538_v33, %v1315_v27 }
 0x125   : > { %1508 = vmatpush2.bf16.msra.mxu0 %v2107_v34 }
 0x126   : > { %1184 = vmatpush1.bf16.msra.mxu1 %v2026_v41  ;;  %1509 = vmatprep.subr.bf16.mxu0 %v2112_v35 }
 0x127   : > { %1185 = vmatprep.subr.bf16.mxu1 %v2031_v42 }
 0x129   : > { %1510 = vmatpush2.bf16.msra.mxu0 %v2110_v36 }
 0x12a   : > { %1186 = vmatpush1.bf16.msra.mxu1 %v2029_v43  ;;  %1511 = vmatprep.subr.bf16.mxu0 %v2115_v37 }
 0x12b   : > { %1187 = vmatprep.subr.bf16.mxu1 %v2034_v44 }
 0x12d   : > { %1512 = vmatpush2.bf16.msra.mxu0 %v2113_v38  ;;  %v1547_v38 = vrot.slane %v1538_v33, %v1319_v28 }
 0x12e   : > { %1188 = vmatpush1.bf16.msra.mxu1 %v2032_v45  ;;  %1513 = vmatprep.subr.bf16.mxu0 %v2118_v40 }
 0x12f   : > { %1189 = vmatprep.subr.bf16.mxu1 %v2037_v46 }
 0x131   : > { %1514 = vmatpush2.bf16.msra.mxu0 %v2116_v39 }
 0x132   : > { %1190 = vmatpush1.bf16.msra.mxu1 %v2035_v47 }
 0x133   : > { %1191 = vmatprep.subr.bf16.mxu1 %v2040_v48 }
 0x136   : > { %1192 = vmatpush1.bf16.msra.mxu1 %v2038_v50 }
 0x137   : > { %1193 = vmatprep.subr.bf16.mxu1 %v2043_v51 }
 0x13a   : > { %1194 = vmatpush1.bf16.msra.mxu1 %v2041_v52 }
 0x13b   : > { %1195 = vmatprep.subr.bf16.mxu1 %v2046_v54 }
 0x13e   : > { %1196 = vmatpush2.bf16.msra.mxu1 %v2044_v55 }
 0x13f   : > { %1197 = vmatprep.subr.bf16.mxu1 %v2049_v56 }
 0x142   : > { %1198 = vmatpush2.bf16.msra.mxu1 %v2047_v57 }
 0x143   : > { %1199 = vmatprep.subr.bf16.mxu1 %v2052_v58 }
 0x146   : > { %1200 = vmatpush2.bf16.msra.mxu1 %v2050_v59 }
 0x147   : > { %1201 = vmatprep.subr.bf16.mxu1 %v2055_v60 }
 0x14a   : > { %1202 = vmatpush2.bf16.msra.mxu1 %v2053_v61 }
 0x14b   : > { %1203 = vmatprep.subr.bf16.mxu1 %v2058_v62 }
 0x14e   : > { %1204 = vmatpush2.bf16.msra.mxu1 %v2056_v63 }
 0x14f   : > { %1205 = vmatprep.subr.bf16.mxu1 %v2061_v0 }
 0x152   : > { %1206 = vmatpush2.bf16.msra.mxu1 %v2059_v1 }
 0x153   : > { %1207 = vmatprep.subr.bf16.mxu1 %v2064_v3 }
 0x156   : > { %1208 = vmatpush2.bf16.msra.mxu1 %v2062_v4 }
 0x157   : > { %1209 = vmatprep.subr.bf16.mxu1 %v2070_v5 }
 0x15a   : > { %1210 = vmatpush2.bf16.msra.mxu1 %v2068_v6 }
 0x15c   : > { %v1170_v44 = vpop.f32.mrf.mxu0 }
 0x15d   : > { %1212 = vmatmul.mubr.bf16.vlgmr.msra.gmra.mxu1 %v499_v9 }
 0x15e   : > { %v1172_v47 = vpop.f32.mrf.mxu0 }
 0x160   : > { %v1174_v50 = vpop.f32.mrf.mxu0 }
 0x162   : > { %v1176_v52 = vpop.f32.mrf.mxu0 }
 0x164   : > { %v1256_v56 = vpop.f32.mrf.mxu0 }
 0x166   : > { %v1258_v62 = vpop.f32.mrf.mxu0 }
 0x168   : > { %v1260_v6 = vpop.f32.mrf.mxu0 }
 0x16a   : > { %v1262_v13 = vpop.f32.mrf.mxu0 }
 0x19d   : > { %v470_v41 = vpop.f32.mrf.mxu1 }
 0x19f   : > { %v472_v42 = vpop.f32.mrf.mxu1 }
 0x1a1   : > { %v476_v43 = vpop.f32.mrf.mxu1 }
 0x1a3   : > { %v478_v45 = vpop.f32.mrf.mxu1 }
 0x1dd   : > { %v1127_v46 = vpop.f32.mrf.mxu1 }
 0x1de   : > { %v1128_v54 = vadd.f32 %v1127_v46, %v470_v41 }
 0x1df   : > { %v1129_v48 = vpop.f32.mrf.mxu1 }
 0x1e0   : > { %v1130_v55 = vadd.f32 %v1129_v48, %v472_v42  ;;  %v1171_v60 = vadd.f32 %v1170_v44, %v1128_v54 }
 0x1e1   : > { %v1131_v51 = vpop.f32.mrf.mxu1 }
 0x1e2   : > { %v1132_v58 = vadd.f32 %v1131_v51, %v476_v43  ;;  %v1173_v61 = vadd.f32 %v1172_v47, %v1130_v55 }
 0x1e3   : > { %v1133_v57 = vpop.f32.mrf.mxu1 }
 0x1e4   : > { %v1134_v63 = vadd.f32 %v1133_v57, %v478_v45  ;;  %v1175_v1 = vadd.f32 %v1174_v50, %v1132_v58  ;;  %v1564_v57 = vpop.permute.xlu0 %1563  ;;  %v1578_v58 = vadd.s32 4294967288, %v2493_v53 }
 0x1e6   : > { %v1177_v8 = vadd.f32 %v1176_v52, %v1134_v63  ;;  %v1581_v63 = vsub.s32 %v1578_v58, %v1314_v25 }
 0x21d   : > { %v1213_v59 = vpop.f32.mrf.mxu1 }
 0x21e   : > { %v1214_v3 = vadd.f32 %v1213_v59, %v1171_v60  ;;  %v1569_v60 = vrot.slane %v1564_v57, %v1315_v27 }
 0x21f   : > { %v1215_v0 = vpop.f32.mrf.mxu1 }
 0x220   : > { %v1216_v4 = vadd.f32 %v1215_v0, %v1173_v61  ;;  %v1257_v11 = vadd.f32 %v1256_v56, %v1214_v3  ;;  %v1576_v61 = vsub.s32 %v2493_v53, %v1314_v25 }
 0x221   : > { %v1217_v5 = vpop.f32.mrf.mxu1 }
 0x222   : > { %v1218_v7 = vadd.f32 %v1217_v5, %v1175_v1  ;;  %v1259_v9 = vadd.f32 %v1258_v62, %v1216_v4  ;;  %v1269_v17 = vmul.f32 0.2, %v1257_v11  ;;  %vm1265_vm5 = vcmp.gt.f32.partialorder %v1257_v11, 0.0 }
 0x223   : > { %v1219_v10 = vpop.f32.mrf.mxu1 }
 0x224   : > { %v1261_v2 = vadd.f32 %v1260_v6, %v1218_v7  ;;  %v1220_v12 = vadd.f32 %v1219_v10, %v1177_v8  ;;  %v1270_v15 = vmul.f32 0.2, %v1259_v9  ;;  %vm1266_vm4 = vcmp.gt.f32.partialorder %v1259_v9, 0.0 }
 0x225   : > { %v1273_v22 = vsel %vm1265_vm5, %v1257_v11, %v1269_v17 }
 0x226   : > { %v1271_v14 = vmul.f32 0.2, %v1261_v2  ;;  %vm1267_vm3 = vcmp.gt.f32.partialorder %v1261_v2, 0.0  ;;  %v1263_v16 = vadd.f32 %v1262_v13, %v1220_v12  ;;  %v1274_v20 = vsel %vm1266_vm4, %v1259_v9, %v1270_v15 }
 0x228   : > { %vm1268_vm6 = vcmp.gt.f32.partialorder %v1263_v16, 0.0  ;;  %v1272_v18 = vmul.f32 0.2, %v1263_v16  ;;  %v1275_v19 = vsel %vm1267_vm3, %v1261_v2, %v1271_v14 }
 0x229   : > { %v1277_v24 = vpack.c.bf16 %v1275_v19, %v1273_v22 }
 0x22a   : > { %v1276_v21 = vsel %vm1268_vm6, %v1263_v16, %v1272_v18 }
 0x22b   : > { %v1278_v23 = vpack.c.bf16 %v1276_v21, %v1274_v20 }
 0x22d   : > { %1515 = vmatprep.mubr.bf16.mxu0 %v1278_v23 }
 0x22e   : > { %1516 = vmatmul.mubr.bf16.vlgmr.msra.gmra.mxu0 %v1277_v24 }
 0x2ee   : > { %v1517_v31 = vpop.f32.mrf.mxu0 }
 0x2ef   : > { %v1518_v32 = vadd.f32 %v1517_v31, %v1316_v29 }
 0x2f0   : > { %v1519_v34 = vpop.f32.mrf.mxu0 }
 0x2f1   : > { %vm1526_vm7 = vcmp.gt.f32.partialorder %v1518_v32, 0.0  ;;  %v1530_v35 = vmul.f32 0.2, %v1518_v32  ;;  %v1520_v36 = vadd.f32 %v1519_v34, %v1320_v30 }
 0x2f2   : > { %v1521_v37 = vpop.f32.mrf.mxu0 }
 0x2f3   : > { %vm1527_vm8 = vcmp.gt.f32.partialorder %v1520_v36, 0.0  ;;  %v1531_v39 = vmul.f32 0.2, %v1520_v36  ;;  %v1522_v40 = vadd.f32 %v1521_v37, %v1316_v29  ;;  %v1534_v41 = vsel %vm1526_vm7, %v1518_v32, %v1530_v35 }
 0x2f4   : > { %v1523_v42 = vpop.f32.mrf.mxu0  ;;  %v1550_v46 = vmul.f32 %v1543_v49, %v1534_v41 }
 0x2f5   : > { %vm1528_vm9 = vcmp.gt.f32.partialorder %v1522_v40, 0.0  ;;  %v1532_v43 = vmul.f32 0.2, %v1522_v40  ;;  %v1524_v44 = vadd.f32 %v1523_v42, %v1320_v30  ;;  %v1535_v45 = vsel %vm1527_vm8, %v1520_v36, %v1531_v39 }
 0x2f6   : > { %v1551_v47 = vmul.f32 %v1547_v38, %v1535_v45 }
 0x2f7   : > { %vm1529_vm10 = vcmp.gt.f32.partialorder %v1524_v44, 0.0  ;;  %v1533_v48 = vmul.f32 0.2, %v1524_v44  ;;  %v1536_v50 = vsel %vm1528_vm9, %v1522_v40, %v1532_v43 }
 0x2f8   : > { %v1554_v51 = vadd.f32 %v1551_v47, %v1550_v46  ;;  %v1552_v54 = vmul.f32 %v1543_v49, %v1536_v50 }
 0x2f9   : > { %v1537_v52 = vsel %vm1529_vm10, %v1524_v44, %v1533_v48 }
 0x2fa   : > { %1555 = vadd.xlane.f32.xlu1 %v1554_v51  ;;  %v1553_v55 = vmul.f32 %v1547_v38, %v1537_v52 }
 0x2fc   : > { %v1557_v56 = vadd.f32 %v1553_v55, %v1552_v54 }
 0x2fe   : > { %1558 = vadd.xlane.f32.xlu1 %v1557_v56 }
 0x383   : > { %v1556_v59 = vpop.xlane.xlu1 %1555 }
 0x384   : > { %v1570_v62 = vadd.f32 %v1569_v60, %v1556_v59 }
 0x386   : > { %v1577_v3 = vrot.slane %v1570_v62, %v1576_v61 }
 0x387   : > { %v1559_v0 = vpop.xlane.xlu1 %1558 }
 0x388   : > { %v1571_v1 = vadd.f32 %v1569_v60, %v1559_v0 }
 0x38a   : > { %v1582_v4 = vrot.slane %v1571_v1, %v1581_v63 }
 0x38c   : > { %v1584_v53 = vsel %vm1583_vm11, %v1582_v4, %v1577_v3 }
 0x38d   : > { %1587 = vst.msk [vmem:[%s370_s26] sm:$0x1] %vm1586_vm12, %v1584_v53 }
 0x38e   : > { %2212 = shalt.err (!%p2209_p13)
}
 0x38f   : > { %s2213_s18 = scalar_lea.hbm %s2526_s15, 16  ;;  %s2217_s21 = scalar_lea.hbm %s2571_s8, 32 }
 0x390   : > { %p2214_p5 = scmp.ne.s32.totalorder %s2526_s15, %s2213_s18  ;;  %p2218_p8 = scmp.lt.s32.totalorder %s2526_s15, %s2571_s8 }
 0x391   : > { %p2219_p3 = scmp.lt.s32.totalorder %s2217_s21, %s2213_s18 }
 0x392   : > { %p2215_p0 = pnand %p2214_p5, %p2589_p1 }
 0x393   : > { %p2220_p11 = por %p2219_p3, %p2218_p8 }
 0x394   : > { %p2216_p4 = pneg %p2215_p0 }
 0x396   : > { %p2221_p10 = pnand %p2220_p11, %p2216_p4 }
 0x398   : > { %2224 = shalt.err (!%p2221_p10)
}
 0x399   : > { %1860 = dma.vmem_to_hbm [thread:$0]  (%p2589_p1), %s1602_s27, 16, %s2526_s15, %s1589_s3  }
 0x39a PF: > { %s1613_s26 = sand.u32 1, %s2255_s29   ;;  %p2590_p2 = scmp.ne.s32.totalorder %s2578_s13, 0 }
 0x39b   : > { %p2591_p6 = scmp.ge.s32.totalorder %s2267_s10, 2  ;;  %s1614_s20 = scalar_lea.sflag [#allocation5], %s1613_s26 }
 0x39d   : > { %p1874_p12 = pnand %p2591_p6, %p2590_p2 }
 0x39f   : > { %p1875_p7 = pneg %p1874_p12 }
 0x3a1   : > { %2250 = dma.done.wait (%p1875_p7), %s1614_s20, 16  }
 0x3a2   : > { %2252 = vsyncadd (%p1875_p7), %s1614_s20, 4294967280  ;;  %p24_p9 = scmp.ge.s32.totalorder %s2399_s28, 4   ;;  %s2592_s29 = smov %s2259_s30 }
 0x3a3   : > { %s2593_s30 = smov %s2263_s9  ;;  %s2594_s9 = smov %s2415_s17 }
 0x3a4   : > { %s2595_s10 = smov %s2399_s28  ;;  %26 = sbr.rel (!%p24_p9) target bundleno = 9 (0x9), region = 108 }
 0x3a9   :  { %1618 = vsyncpa [#allocation4], 1 }
 0x3aa   :  { %1620 = vsyncpa [#allocation4 + $0x1], 1 }
 0x3ab   :  { %1621 = vsyncpa [#allocation7], 1 }
 0x3ac   :  { %1622 = vsyncpa [#allocation5], 1 }
 0x3ad   :  { %1624 = vsyncpa [#allocation5 + $0x1], 1 }

</bundles_post_ra>
